<compile_context>
chip_gen: v6e
topology: v6e:2x2x1
jax: 0.10.0
libtpu: 0.0.40
codegen_flags: <defaults>
</compile_context>

<pallas_src>
import functools

import jax
import jax.numpy as jnp
from jax.experimental import pallas as pl
from jax.experimental.pallas import tpu as pltpu


def _round_up(x: int, m: int) -> int:
    return ((x + m - 1) // m) * m


def _linear_kernel(x_ref, w_ref, b_ref, o_ref):
    # x_ref: (TM, H) f32, w_ref: (H, O) f32, b_ref: (1, O) f32, o_ref: (TM, O) f32.
    # Single MXU matmul with f32 accumulation; bias add on the VPU.
    acc = jnp.dot(x_ref[...], w_ref[...], preferred_element_type=jnp.float32)
    o_ref[...] = (acc + b_ref[...]).astype(o_ref.dtype)


def prepare_params(w, b):
    """One-time parameter prep (hoisted out of the per-call forward path).

    w: [out_features, hidden] (PyTorch nn.Linear weight layout).
    b: [out_features].
    Returns (w_t [hidden, out_features], b2d [1, out_features]) in f32.
    """
    w_t = jnp.asarray(w, jnp.float32).T
    b2d = jnp.asarray(b, jnp.float32).reshape(1, -1)
    return w_t, b2d


@functools.partial(jax.jit, static_argnames=("tm",))
def interaction_encoder_forward(g, w_t, b2d, *, tm: int = 1024):
    """Forward pass of InteractionEncoder (Linear projection part).

    g:   [batch, hidden] f32 (output of Protmod; identity here — see TODO).
    w_t: [hidden, out_features] f32 (pre-transposed weight from prepare_params).
    b2d: [1, out_features] f32.
    Returns [batch, out_features] f32.
    """
    batch, hidden = g.shape
    out_features = w_t.shape[1]

    # TODO(synk): Protmod encoder not defined in the spec -> identity.
    x = g

    # Row tile: multiple of 8 (sublane). Cap at ~ceil(batch/2) so that when the
    # batch is large enough the grid has >= 2 steps and the "parallel" axis can
    # shard across v7x's two TensorCores. No batch padding: Pallas handles the
    # ragged last block (OOB rows undefined on read, dropped on write; rows are
    # independent so no garbage leaks into valid outputs).
    tm_eff = min(tm, max(8, _round_up(-(-batch // 2), 8)))
    tm_eff = min(tm_eff, _round_up(batch, 8))
    grid = (pl.cdiv(batch, tm_eff),)

    # v5e's default scoped VMEM is 16 MiB; only raise the limit if the
    # double-buffered x/out blocks plus resident weights actually need it.
    block_bytes = (2 * tm_eff * hidden * 4            # x (double-buffered)
                   + 2 * tm_eff * out_features * 4    # out (double-buffered)
                   + 2 * (hidden + 1) * out_features * 4)  # w_t + bias buffers
    vmem_limit = None
    if block_bytes > (16 << 20):
        vmem_limit = min(block_bytes + (4 << 20), 64 << 20)

    cost = pl.CostEstimate(
        flops=2 * batch * hidden * out_features,
        transcendentals=0,
        bytes_accessed=(batch * hidden * 4             # x
                        + hidden * out_features * 4    # w_t
                        + out_features * 4             # bias
                        + batch * out_features * 4),   # out
    )

    y = pl.pallas_call(
        _linear_kernel,
        out_shape=jax.ShapeDtypeStruct((batch, out_features), jnp.float32),
        grid_spec=pl.GridSpec(
            grid=grid,
            in_specs=[
                # x: tiled over batch (double-buffered by Pallas).
                pl.BlockSpec((tm_eff, hidden), lambda i: (i, 0)),
                # w_t / bias: constant index_map -> stay VMEM-resident.
                pl.BlockSpec((hidden, out_features), lambda i: (0, 0)),
                pl.BlockSpec((1, out_features), lambda i: (0, 0)),
            ],
            out_specs=pl.BlockSpec((tm_eff, out_features), lambda i: (i, 0)),
        ),
        compiler_params=pltpu.CompilerParams(
            dimension_semantics=("parallel",),  # rows independent -> megacore
            vmem_limit_bytes=vmem_limit,
        ),
        cost_estimate=cost,
    )(x, w_t, b2d)

    return y


def init_params(key, hidden, out_dim):
    """Deterministic init matching nn.Linear(hidden, out_dim - 2) shapes."""
    out_features = out_dim - 2
    k_w, k_b = jax.random.split(key)
    bound = 1.0 / (hidden ** 0.5)  # PyTorch default uniform(-1/sqrt(in), 1/sqrt(in))
    w = jax.random.uniform(k_w, (out_features, hidden), jnp.float32, -bound, bound)
    b = jax.random.uniform(k_b, (out_features,), jnp.float32, -bound, bound)
    return w, b


if __name__ == "__main__":
    # Small shapes consistent with the module: hidden=32, out_dim=34 -> out=32.
    batch, hidden, out_dim = 8, 32, 34
    key = jax.random.PRNGKey(0)
    k_g, k_p = jax.random.split(key)

    # `g` stands in for the Protmod output features (see TODO above).
    g = jax.random.normal(k_g, (batch, hidden), jnp.float32)
    w, b = init_params(k_p, hidden, out_dim)

    # One-time weight prep (parameter-load time), then the forward.
    w_t, b2d = prepare_params(w, b)
    y = interaction_encoder_forward(g, w_t, b2d)
    jax.block_until_ready(y)

    # Reference check in plain JAX (full f32 path -> tight tolerance).
    y_ref = g @ w.T + b
    assert y.shape == (batch, out_dim - 2)
    assert jnp.allclose(y, y_ref, atol=1e-5, rtol=1e-5), (
        float(jnp.max(jnp.abs(y - y_ref))))

    print("KERNEL_OK")
</pallas_src>

<mosaic_0001>
module attributes {stable_mosaic.version = 11 : i64} {
  func.func @_linear_kernel(%arg0: i32, %arg1: memref<8x32xf32, #tpu.memory_space<vmem>>, %arg2: memref<32x32xf32, #tpu.memory_space<vmem>>, %arg3: memref<1x32xf32, #tpu.memory_space<vmem>>, %arg4: memref<8x32xf32, #tpu.memory_space<vmem>>) attributes {dimension_semantics = [#tpu.dimension_semantics<parallel>], iteration_bounds = array<i64: 1>, scalar_prefetch = 0 : i64, scratch_operands = 0 : i64, tpu.core_type = #tpu.core_type<tc>, window_params = [{transform_indices = @transform_0, window_bounds = array<i64: 8, 32>}, {pipeline_mode = #tpu.pipeline_mode<synchronous>, transform_indices = @transform_1, window_bounds = array<i64: 32, 32>}, {pipeline_mode = #tpu.pipeline_mode<synchronous>, transform_indices = @transform_2, window_bounds = array<i64: 1, 32>}, {transform_indices = @transform_3, window_bounds = array<i64: 8, 32>}]} {
    %c0 = arith.constant 0 : index
    %c0_0 = arith.constant 0 : index
    %0 = vector.load %arg1[%c0, %c0_0] : memref<8x32xf32, #tpu.memory_space<vmem>>, vector<8x32xf32>
    %c0_1 = arith.constant 0 : index
    %c0_2 = arith.constant 0 : index
    %1 = vector.load %arg2[%c0_1, %c0_2] : memref<32x32xf32, #tpu.memory_space<vmem>>, vector<32x32xf32>
    %cst = arith.constant dense<0.000000e+00> : vector<8x32xf32>
    %2 = tpu.matmul %0, %1, %cst {dimension_numbers = #tpu.dot_dimension_numbers<[1], [0], [0], [1], [0, 0, 1, 1], [], []>} : vector<8x32xf32>, vector<32x32xf32>, vector<8x32xf32> -> vector<8x32xf32>
    %c0_3 = arith.constant 0 : index
    %c0_4 = arith.constant 0 : index
    %3 = vector.load %arg3[%c0_3, %c0_4] : memref<1x32xf32, #tpu.memory_space<vmem>>, vector<1x32xf32>
    %4 = vector.broadcast %3 : vector<1x32xf32> to vector<8x32xf32>
    %5 = arith.addf %2, %4 : vector<8x32xf32>
    %c0_5 = arith.constant 0 : index
    %c0_6 = arith.constant 0 : index
    %6 = vector.load %arg4[%c0_5, %c0_6] : memref<8x32xf32, #tpu.memory_space<vmem>>, vector<8x32xf32>
    tpu.vector_store %arg4[%c0_5, %c0_6], %5 {strides = array<i32>} : memref<8x32xf32, #tpu.memory_space<vmem>>, vector<8x32xf32>,
    return
  }
  func.func @transform_0(%arg0: i32) -> (i32, i32) {
    %c0_i32 = arith.constant 0 : i32
    %c0_i32_0 = arith.constant 0 : i32
    return %arg0, %c0_i32 : i32, i32
  }
  func.func @transform_1(%arg0: i32) -> (i32, i32) {
    %c0_i32 = arith.constant 0 : i32
    %c0_i32_0 = arith.constant 0 : i32
    %c0_i32_1 = arith.constant 0 : i32
    return %c0_i32, %c0_i32_0 : i32, i32
  }
  func.func @transform_2(%arg0: i32) -> (i32, i32) {
    %c0_i32 = arith.constant 0 : i32
    %c0_i32_0 = arith.constant 0 : i32
    %c0_i32_1 = arith.constant 0 : i32
    return %c0_i32, %c0_i32_0 : i32, i32
  }
  func.func @transform_3(%arg0: i32) -> (i32, i32) {
    %c0_i32 = arith.constant 0 : i32
    %c0_i32_0 = arith.constant 0 : i32
    return %arg0, %c0_i32 : i32, i32
  }
}

</mosaic_0001>

<bundles_post_ra>
// kernel: interaction_encoder_forward.1
= control target key start
LH: loop header
LB: loop body
LE: loop exit
PB: predicated region body
PF: predicated region fallthrough
CT: control target
= control target key end

     0   :  { %8 = vsyncpa [#allocation3], 0  ;;  %s274_s0 = inlined_call_operand.hbm [shape: f32[8,32], index: 0, kind: input, shape index: {}]   ;;  %s275_s1 = inlined_call_operand.hbm [shape: f32[32,32], index: 1, kind: input, shape index: {}]   ;;  %s276_s2 = inlined_call_operand.vmem [shape: f32[1,32], index: 2, kind: input, shape index: {}]   ;;  %s277_s3 = inlined_call_operand.hbm [shape: f32[8,32], index: 3, kind: output, shape index: {}]  }
   0x1   :  { %9 = vsyncpa [#allocation6], 0 }
   0x2   :  { %10 = vsyncpa [#allocation4], 0  ;;  %s235_s12 = smov [#allocation2]   ;;  %s236_s14 = smov [#allocation5]  }
   0x3   :  { %s17_s13 = sshll.u32 %s235_s12, 4  ;;  %s26_s15 = sshll.u32 %s236_s14, 4  ;;  %s18_s13 = int_to_ptr.vmem [resolvable:$true] %s17_s13  ;;  %s27_s15 = int_to_ptr.vmem [resolvable:$true] %s26_s15 }
   0x4   :  { %s177_s16 = scalar_lea.vmem %s18_s13, 128  ;;  %p182_p1 = scmp.lt.s32.totalorder %s18_s13, %s18_s13 }
   0x5   :  { %p178_p0 = scmp.ne.s32.totalorder %s18_s13, %s177_s16  ;;  %p183_p2 = scmp.lt.s32.totalorder %s177_s16, %s177_s16 }
   0x7   :  { %p184_p3 = por %p183_p2, %p182_p1 }
   0x9   :  { %p185_p4 = pnand %p184_p3, %p178_p0 }
   0xb   :  { %188 = shalt.err (!%p185_p4)
}
   0xc   :  { %20 = dma.hbm_to_vmem [thread:$0]  %s274_s0, 128, %s18_s13, [#allocation3]  }
   0xd   :  { %s197_s19 = scalar_lea.vmem %s27_s15, 512  ;;  %p202_p6 = scmp.lt.s32.totalorder %s27_s15, %s27_s15 }
   0xe   :  { %p198_p5 = scmp.ne.s32.totalorder %s27_s15, %s197_s19  ;;  %p203_p7 = scmp.lt.s32.totalorder %s197_s19, %s197_s19 }
  0x10   :  { %p204_p8 = por %p203_p7, %p202_p6 }
  0x12   :  { %p205_p9 = pnand %p204_p8, %p198_p5 }
  0x14   :  { %208 = shalt.err (!%p205_p9)
}
  0x15   :  { %s237_s20 = smov 128   ;;  %s238_s21 = smov 8  }
  0x16   :  { %32 = dma.hbm_to_vmem [thread:$0]  %s275_s1, 512, %s27_s15, [#allocation6], %s237_s20, %s237_s20, %s238_s21  }
  0x17   :  { %229 = dma.done.wait [#allocation3], 128  }
  0x18   :  { %230 = vsyncadd [#allocation3], 4294967168 }
  0x19   :  { %231 = dma.done.wait [#allocation6], 512  }
  0x1a   :  { %232 = vsyncadd [#allocation6], 4294966784  ;;  %v239_v0 = vmov 0.0   ;;  %vm240_vm0 = vmmov 0   ;;  %v45_v1 = vld [vmem:[#allocation5 + $0x18] sm:$0xff]  ;;  %v44_v2 = vld [vmem:[#allocation5 + $0x10] sm:$0xff] }
  0x1b   :  { %151 = vmatprep.subr.mxu0 %v239_v0  ;;  %159 = vmatprep.mubr.msk.f32.mxu0 %vm240_vm0, %v239_v0  ;;  %v43_v3 = vld [vmem:[#allocation5 + $0x8] sm:$0xff]  ;;  %v42_v4 = vld [vmem:[#allocation5] sm:$0xff]  ;;  %v41_v5 = vld [vmem:[#allocation2] sm:$0xff]  ;;  %vm53_vm1 = vcmask 261120   ;;  %s241_s24 = smov [#allocation7]  }
  0x1c   :  { %152 = vmatpush3.msra.mxu0 %v45_v1  ;;  %v144_v6 = vld [vmem:[%s276_s2] ss:$0 sm:$0xff]  ;;  %s134_s25 = sshll.u32 %s241_s24, 4  ;;  %s135_s25 = int_to_ptr.vmem [resolvable:$true] %s134_s25 }
  0x1d   :  { %153 = vmatprep.subr.mxu0 %v239_v0  ;;  %s209_s26 = scalar_lea.vmem %s135_s25, 128  ;;  %p214_p11 = scmp.lt.s32.totalorder %s135_s25, %s135_s25 }
  0x1e   :  { %154 = vmatpush3.msra.mxu0 %v44_v2  ;;  %p210_p10 = scmp.ne.s32.totalorder %s135_s25, %s209_s26  ;;  %p215_p12 = scmp.lt.s32.totalorder %s209_s26, %s209_s26 }
  0x1f   :  { %155 = vmatprep.subr.mxu0 %v239_v0 }
  0x20   :  { %156 = vmatpush3.msra.mxu0 %v43_v3  ;;  %p216_p13 = por %p215_p12, %p214_p11 }
  0x21   :  { %157 = vmatprep.subr.mxu0 %v239_v0 }
  0x22   :  { %158 = vmatpush3.msra.mxu0 %v42_v4  ;;  %p217_p0 = pnand %p216_p13, %p210_p10 }
  0x23   :  { %160 = vmatmul.mubr.msk.f32.vlgmr.msra.gmra.mxu0 %vm53_vm1, %v41_v5 }
  0xe3   :  { %v123_v7 = vpop.f32.mrf.mxu0 }
  0xe4   :  { %v124_v8 = vadd.f32 %v144_v6, %v123_v7 }
  0xe5   :  { %v161_v9 = vpop.f32.mrf.mxu0 }
  0xe6   :  { %127 = vst.msk [vmem:[#allocation7] sm:$0xff] %vm53_vm1, %v124_v8 }
  0xe7   :  { %220 = shalt.err (!%p217_p0)
}
  0xe8   :  { %137 = dma.vmem_to_hbm [thread:$0]  %s135_s25, 128, %s277_s3, [#allocation4]  }
  0xe9   :  { %233 = dma.done.wait [#allocation4], 128  }
  0xea   :  { %234 = vsyncadd [#allocation4], 4294967168 }
  0xeb   :  { %141 = vsyncpa [#allocation3], 1 }
  0xec   :  { %142 = vsyncpa [#allocation6], 1 }
  0xed   :  { %143 = vsyncpa [#allocation4], 1 }

</bundles_post_ra>
